<compile_context>
chip_gen: v5e
topology: v5e:2x2
jax: 0.10.0
libtpu: 0.0.40
codegen_flags: <defaults>
</compile_context>

<pallas_src>
import jax
import jax.numpy as jnp
from jax.experimental import pallas as pl
from jax.experimental.pallas import tpu as pltpu


# ----------------------------------------------------------------------------
# Default path: pure pass-through (the module's forward semantics).
# ----------------------------------------------------------------------------
def identity_forward(x: jax.Array) -> jax.Array:
    """IdentityModule.forward: return x unchanged (no kernel, no HBM traffic)."""
    return x


# ----------------------------------------------------------------------------
# Kernel path A: aliased no-op pallas_call (output buffer == input buffer).
# ----------------------------------------------------------------------------
def _identity_alias_kernel(x_hbm, o_hbm, flag_smem):
    # The output is aliased to the input (input_output_aliases={0: 0}), so it
    # already holds x's data: there is nothing to move.  A single scalar SMEM
    # store keeps the body non-trivial; it costs one sst and touches no HBM
    # or VMEM.
    del x_hbm, o_hbm
    flag_smem[0] = jnp.int32(1)


def identity_alias(x: jax.Array) -> jax.Array:
    """Identity through a Pallas kernel with the output aliased to the input.

    With a donated input the copy is elided entirely; with a non-donated input
    XLA inserts at most one defensive copy (never worse than an explicit DMA).
    """
    return pl.pallas_call(
        _identity_alias_kernel,
        out_shape=jax.ShapeDtypeStruct(x.shape, x.dtype),
        # Raw HBM refs: no automatic tile DMAs, no VMEM staging.
        in_specs=[pl.BlockSpec(memory_space=pl.ANY)],
        out_specs=pl.BlockSpec(memory_space=pl.ANY),
        scratch_shapes=[pltpu.SMEM((1,), jnp.int32)],
        input_output_aliases={0: 0},
    )(x)


# ----------------------------------------------------------------------------
# Kernel path B: physical copy (only if a distinct output buffer is required).
# Chunked multi-DMA, start-all-then-wait-all, zero VMEM footprint.
# ----------------------------------------------------------------------------
def _make_copy_kernel(bounds):
    """bounds: tuple of (start, size) static slices along the leading dim,
    or None for a single whole-array DMA."""

    def kernel(x_hbm, o_hbm, sems):
        if bounds is None:
            cp = pltpu.make_async_copy(x_hbm, o_hbm, sems.at[0])
            cp.start()
            cp.wait()
            return
        # Issue every chunk DMA before waiting on any, so multiple descriptors
        # are in flight and per-descriptor setup latency is hidden.
        copies = []
        for i, (start, size) in enumerate(bounds):
            cp = pltpu.make_async_copy(
                x_hbm.at[pl.ds(start, size)],
                o_hbm.at[pl.ds(start, size)],
                sems.at[i],
            )
            cp.start()
            copies.append(cp)
        for cp in copies:
            cp.wait()

    return kernel


def identity_copy(x: jax.Array, *, max_chunks: int = 8) -> jax.Array:
    """Identity that guarantees a distinct output buffer (physical HBM copy)."""
    nbytes = x.size * jnp.dtype(x.dtype).itemsize

    if x.ndim == 0 or x.shape[0] <= 1:
        bounds = None
        n_sems = 1
    else:
        lead = x.shape[0]
        n = max(1, min(max_chunks, lead))
        base, rem = divmod(lead, n)
        bounds = []
        start = 0
        for i in range(n):
            size = base + (1 if i < rem else 0)
            bounds.append((start, size))
            start += size
        bounds = tuple(bounds)
        n_sems = n

    return pl.pallas_call(
        _make_copy_kernel(bounds),
        out_shape=jax.ShapeDtypeStruct(x.shape, x.dtype),
        in_specs=[pl.BlockSpec(memory_space=pl.ANY)],
        out_specs=pl.BlockSpec(memory_space=pl.ANY),
        scratch_shapes=[pltpu.SemaphoreType.DMA((n_sems,))],
        # Advisory hint so XLA can overlap surrounding ops with this copy.
        cost_estimate=pl.CostEstimate(
            flops=0, transcendentals=0, bytes_accessed=2 * nbytes
        ),
    )(x)


if __name__ == "__main__":
    key = jax.random.PRNGKey(0)
    # NCHW input consistent with the module's typical image-model usage.
    x = jax.random.normal(key, (2, 4, 16, 16), dtype=jnp.float32)

    # 1) Default path: pure pass-through — no kernel launch, no HBM traffic.
    y = identity_forward(x)
    assert y is x

    # 2) Aliased no-op kernel path (output buffer aliases the input).
    y_alias = identity_alias(x)
    jax.block_until_ready(y_alias)
    assert y_alias.shape == x.shape and y_alias.dtype == x.dtype
    assert bool(jnp.array_equal(y_alias, x))

    # 3) Physical-copy kernel path (distinct buffer, chunked in-flight DMAs).
    y_copy = identity_copy(x)
    jax.block_until_ready(y_copy)
    assert y_copy.shape == x.shape and y_copy.dtype == x.dtype
    assert bool(jnp.array_equal(y_copy, x))

    print("KERNEL_OK")
</pallas_src>

<mosaic_0001>
module attributes {stable_mosaic.version = 11 : i64} {
  func.func @_identity_alias_kernel(%arg0: memref<2x4x16x16xf32, #tpu.memory_space<any>>, %arg1: memref<2x4x16x16xf32, #tpu.memory_space<any>>, %arg2: memref<1xi32, #tpu.memory_space<smem>>) attributes {dimension_semantics = [], scalar_prefetch = 0 : i64, scratch_operands = 1 : i64, tpu.core_type = #tpu.core_type<tc>} {
    %c1_i32 = arith.constant 1 : i32
    %c0 = arith.constant 0 : index
    %0 = memref.load %arg2[%c0] : memref<1xi32, #tpu.memory_space<smem>>
    memref.store %c1_i32, %arg2[%c0] : memref<1xi32, #tpu.memory_space<smem>>
    return
  }
}

</mosaic_0001>

<bundles_post_ra>
// kernel: tpu_custom_call.1
= control target key start
LH: loop header
LB: loop body
LE: loop exit
PB: predicated region body
PF: predicated region fallthrough
CT: control target
= control target key end

     0   :  { %s18_s0 = inlined_call_operand.hbm [shape: f32[2,4,16,16], index: 0, kind: input, shape index: {}, may-alias: {0,1}]   ;;  %s19_s1 = inlined_call_operand.hbm [shape: f32[2,4,16,16], index: 1, kind: output, shape index: {}, may-alias: {0,1}]  }

</bundles_post_ra>
